<compile_context>
chip_gen: v7x
topology: tpu7x:2x2x1
jax: 0.10.0
libtpu: 0.0.40
codegen_flags: <defaults>
</compile_context>

<pallas_src>
import math
from functools import partial

import jax
import jax.numpy as jnp
from jax.experimental import pallas as pl
from jax.experimental.pallas import tpu as pltpu


def _round_up(x, m):
    return ((x + m - 1) // m) * m


def _tpu_info():
    try:
        return pltpu.get_tpu_info()
    except Exception:
        return None


def _vmem_budget_bytes():
    cap = 0
    info = _tpu_info()
    if info is not None:
        try:
            cap = int(getattr(info, "vmem_capacity_bytes", 0) or 0)
        except Exception:
            cap = 0
    if cap <= 0:
        cap = 64 * 1024 * 1024  # conservative (v7x-class) fallback
    # Leave headroom for Mosaic internal scratch + pipeline double buffers.
    return (cap * 85) // 100


def _default_row_tile():
    info = _tpu_info()
    name = ""
    if info is not None:
        try:
            name = str(getattr(info, "chip_version", "")).lower()
        except Exception:
            name = ""
    if "v6" in name or "6e" in name:
        return 256  # 128 MiB VMEM + big MXU -> larger row tile
    return 128      # v5e (weak VPU) / v7x (64 MiB VMEM) / unknown


def _contrastive_terms_kernel(yi_ref, yj_ref, yt_ref, out_ref,
                              rsi_ref, rsj_ref, *, denom_offset):
    """One (row-pair block, column chunk) step.

    yi_ref/yj_ref: (TM, D) normalized rows, pre-scaled by sqrt(1/tau).
    yt_ref:        (D, TN) column chunk of the transposed concat [yi; yj].
    out_ref:       (TM, 1) per-row-pair loss terms (written at last chunk).
    rsi/rsj:       (TM, 1) f32 exp-row-sum accumulators (scratch).
    """
    j = pl.program_id(1)

    @pl.when(j == 0)
    def _init():
        rsi_ref[...] = jnp.zeros_like(rsi_ref)
        rsj_ref[...] = jnp.zeros_like(rsj_ref)

    li = yi_ref[...]                     # (TM, D) f32
    lj = yj_ref[...]
    rc = yt_ref[...]                     # (D, TN) f32

    dn = (((1,), (0,)), ((), ()))        # canonical K-on-dim-0 contraction
    si = jax.lax.dot_general(li, rc, dn, preferred_element_type=jnp.float32)
    sj = jax.lax.dot_general(lj, rc, dn, preferred_element_type=jnp.float32)

    # Scores already carry 1/tau; padded columns contribute exp(0)=1 each and
    # are removed via the constant denom_offset at finalize.
    rsi_ref[...] += jnp.sum(jnp.exp(si), axis=-1, keepdims=True)
    rsj_ref[...] += jnp.sum(jnp.exp(sj), axis=-1, keepdims=True)

    @pl.when(j == pl.num_programs(1) - 1)
    def _finalize():
        # Positive-pair logit: li.lj == cos(xi, xj) / tau.
        cos = jnp.sum(li * lj, axis=-1, keepdims=True)
        # -log(exp(cos) / (rowsum - exp(1/tau))) summed over the two rows of
        # the pair == log(rsi - off) + log(rsj - off) - 2*cos.
        # Padded rows may yield log of a negative (NaN); the wrapper slices
        # them away (never replace that slice with an arithmetic mask).
        out_ref[...] = (jnp.log(rsi_ref[...] - denom_offset)
                        + jnp.log(rsj_ref[...] - denom_offset)
                        - 2.0 * cos)


def normalize_contrastive_loss(xi, xj, temperature, normalize=True,
                               block_rows=None, block_cols=1024):
    """Pallas TPU forward of NormalizeContrastiveLoss. xi, xj: (B, D)."""
    B, D = xi.shape
    assert xj.shape == (B, D)
    tau = float(temperature)
    inv_tau = 1.0 / tau

    # ---- O(B*D) row prep (wrapper-side XLA; negligible vs O(B^2*D)) --------
    scale = jnp.float32(math.sqrt(inv_tau))

    def prep(v):
        v = v.astype(jnp.float32)
        ss = jnp.sum(v * v, axis=-1, keepdims=True)
        if normalize:
            # Reference double-normalization folds to exactly x / ||x||.
            inv = jax.lax.rsqrt(ss + 1e-24)
        else:
            inv = 1.0 / (jnp.sqrt(ss) + 1e-12)
        return v * (inv * scale)

    yi = prep(xi)   # (B, D), ||row||^2 == 1/tau (normalize=True)
    yj = prep(xj)

    # ---- tiling / padding ---------------------------------------------------
    if block_rows is None:
        block_rows = _default_row_tile()
    TM = _round_up(min(int(block_rows), max(B, 1)), 8)
    B_pad = _round_up(B, TM)
    nb = B_pad // TM
    if B_pad != B:
        pad = ((0, B_pad - B), (0, 0))
        yi = jnp.pad(yi, pad)          # padded rows are exactly zero
        yj = jnp.pad(yj, pad)

    C = 2 * B_pad
    TN = max(_round_up(int(block_cols), 128), 128)
    if C <= TN:
        TN = C                         # single chunk: full (lane) dim allowed
        C_pad = C
    else:
        C_pad = _round_up(C, TN)
    nc = C_pad // TN

    # Lane-dense, pre-transposed RHS; padded columns are exactly zero.
    yt = jnp.concatenate([yi, yj], axis=0).T        # (D, 2*B_pad)
    if C_pad != C:
        yt = jnp.pad(yt, ((0, 0), (0, C_pad - C)))

    # exp(0)=1 from every padded column + self-similarity term exp(1/tau).
    denom_offset = float(math.exp(inv_tau) + (C_pad - 2 * B))

    # ---- VMEM budget / cost hint -------------------------------------------
    est_vmem = (2 * 2 * TM * D * 4      # two lhs blocks, double-buffered
                + 2 * D * TN * 4        # RHS chunk, double-buffered
                + 4 * TM * TN * 4       # score/exp intermediates headroom
                + (2 << 20))
    vmem_limit = int(min(max(est_vmem, 32 * 1024 * 1024), _vmem_budget_bytes()))

    cost = pl.CostEstimate(
        flops=int(2 * 2 * B_pad * C_pad * D + 6 * B * D),
        transcendentals=int(2 * B_pad * C_pad),
        bytes_accessed=int((2 * B_pad * D + D * C_pad) * 4 + B_pad * 4),
    )

    kernel = partial(_contrastive_terms_kernel, denom_offset=denom_offset)

    terms = pl.pallas_call(
        kernel,
        out_shape=jax.ShapeDtypeStruct((B_pad, 1), jnp.float32),
        grid_spec=pltpu.PrefetchScalarGridSpec(
            num_scalar_prefetch=0,
            grid=(nb, nc),
            in_specs=[
                pl.BlockSpec((TM, D), lambda i, j: (i, 0)),   # xi-half rows
                pl.BlockSpec((TM, D), lambda i, j: (i, 0)),   # xj-half rows
                pl.BlockSpec((D, TN), lambda i, j: (0, j)),   # RHS column chunk
            ],
            out_specs=pl.BlockSpec((TM, 1), lambda i, j: (i, 0)),
            scratch_shapes=[
                pltpu.VMEM((TM, 1), jnp.float32),             # rsi accumulator
                pltpu.VMEM((TM, 1), jnp.float32),             # rsj accumulator
            ],
        ),
        compiler_params=pltpu.CompilerParams(
            dimension_semantics=("parallel", "arbitrary"),
            vmem_limit_bytes=vmem_limit,
        ),
        cost_estimate=cost,
    )(yi, yj, yt)

    # Slice (don't arithmetically mask) the valid rows, then mean over 2B rows.
    return jnp.sum(terms[:B, 0]) / (2.0 * B)


def _reference_loss(xi, xj, tau, do_normalize=True):
    """Pure-JAX reference mirroring the PyTorch module, for verification."""
    def norm_rows(v):
        return v / (jnp.linalg.norm(v, axis=-1, keepdims=True) + 1e-12)
    xi = norm_rows(xi)
    xj = norm_rows(xj)
    x = jnp.concatenate([xi, xj], axis=0)
    sim_mat = x @ x.T
    if do_normalize:
        nx = jnp.linalg.norm(x, axis=1, keepdims=True)
        sim_mat = sim_mat / jnp.maximum(nx @ nx.T, 1e-16)
    sim_mat = jnp.exp(sim_mat / tau)
    if do_normalize:
        denom = jnp.linalg.norm(xi, axis=1) * jnp.linalg.norm(xj, axis=1)
        sim_match = jnp.exp(jnp.sum(xi * xj, axis=-1) / denom / tau)
    else:
        sim_match = jnp.exp(jnp.sum(xi * xj, axis=-1) / tau)
    sim_match = jnp.concatenate([sim_match, sim_match], axis=0)
    norm_sum = jnp.exp(jnp.ones(x.shape[0]) / tau)
    return jnp.mean(-jnp.log(sim_match / (jnp.sum(sim_mat, axis=-1) - norm_sum)))


if __name__ == "__main__":
    key = jax.random.PRNGKey(0)
    ki, kj = jax.random.split(key)
    tau = 0.5

    # B=20 with an 8-row tile exercises multiple row blocks, row padding and
    # the constant padded-column correction.
    B, D = 20, 32
    xi = jax.random.normal(ki, (B, D), dtype=jnp.float32)
    xj = jax.random.normal(kj, (B, D), dtype=jnp.float32)
    for do_norm in (True, False):
        loss = jax.block_until_ready(
            normalize_contrastive_loss(xi, xj, tau, normalize=do_norm,
                                       block_rows=8))
        ref = jax.block_until_ready(_reference_loss(xi, xj, tau, do_norm))
        assert jnp.allclose(loss, ref, rtol=1e-3, atol=1e-4), (do_norm, loss, ref)

    # Multi-chunk column path (nc > 1) + column padding correction.
    B2, D2 = 72, 64
    xi2 = jax.random.normal(ki, (B2, D2), dtype=jnp.float32)
    xj2 = jax.random.normal(kj, (B2, D2), dtype=jnp.float32)
    loss2 = jax.block_until_ready(
        normalize_contrastive_loss(xi2, xj2, tau, normalize=True,
                                   block_rows=16, block_cols=128))
    ref2 = jax.block_until_ready(_reference_loss(xi2, xj2, tau, True))
    assert jnp.allclose(loss2, ref2, rtol=1e-3, atol=1e-4), (loss2, ref2)

    # Single-block, no-padding path with chip-default tiles.
    B3 = 8
    xi3 = jax.random.normal(ki, (B3, D), dtype=jnp.float32)
    xj3 = jax.random.normal(kj, (B3, D), dtype=jnp.float32)
    loss3 = jax.block_until_ready(
        normalize_contrastive_loss(xi3, xj3, tau, normalize=True))
    ref3 = jax.block_until_ready(_reference_loss(xi3, xj3, tau, True))
    assert jnp.allclose(loss3, ref3, rtol=1e-3, atol=1e-4), (loss3, ref3)

    print("KERNEL_OK")
</pallas_src>

<mosaic_0001>
module attributes {stable_mosaic.version = 11 : i64} {
  func.func @_contrastive_terms_kernel(%arg0: i32, %arg1: i32, %arg2: memref<8x32xf32, #tpu.memory_space<vmem>>, %arg3: memref<8x32xf32, #tpu.memory_space<vmem>>, %arg4: memref<32x48xf32, #tpu.memory_space<vmem>>, %arg5: memref<8x1xf32, #tpu.memory_space<vmem>>, %arg6: memref<8x1xf32, #tpu.memory_space<vmem>>, %arg7: memref<8x1xf32, #tpu.memory_space<vmem>>) attributes {dimension_semantics = [#tpu.dimension_semantics<parallel>, #tpu.dimension_semantics<arbitrary>], iteration_bounds = array<i64: 3, 1>, scalar_prefetch = 0 : i64, scratch_operands = 2 : i64, tpu.core_type = #tpu.core_type<tc>, window_params = [{transform_indices = @transform_0, window_bounds = array<i64: 8, 32>}, {transform_indices = @transform_1, window_bounds = array<i64: 8, 32>}, {transform_indices = @transform_2, window_bounds = array<i64: 32, 48>}, {transform_indices = @transform_3, window_bounds = array<i64: 8, 1>}]} {
    %c0_i32 = arith.constant 0 : i32
    %0 = arith.cmpi eq, %arg1, %c0_i32 : i32
    %1 = arith.extui %0 : i1 to i32
    %c0_i32_0 = arith.constant 0 : i32
    %2 = arith.cmpi ne, %1, %c0_i32_0 : i32
    scf.if %2 {
      %cst_19 = arith.constant 0.000000e+00 : f32
      %23 = vector.broadcast %cst_19 : f32 to vector<8x1xf32>
      %c0_20 = arith.constant 0 : index
      %c0_21 = arith.constant 0 : index
      %24 = vector.load %arg6[%c0_20, %c0_21] : memref<8x1xf32, #tpu.memory_space<vmem>>, vector<8x1xf32>
      tpu.vector_store %arg6[%c0_20, %c0_21], %23 {strides = array<i32>} : memref<8x1xf32, #tpu.memory_space<vmem>>, vector<8x1xf32>,
      %cst_22 = arith.constant 0.000000e+00 : f32
      %25 = vector.broadcast %cst_22 : f32 to vector<8x1xf32>
      %c0_23 = arith.constant 0 : index
      %c0_24 = arith.constant 0 : index
      %26 = vector.load %arg7[%c0_23, %c0_24] : memref<8x1xf32, #tpu.memory_space<vmem>>, vector<8x1xf32>
      tpu.vector_store %arg7[%c0_23, %c0_24], %25 {strides = array<i32>} : memref<8x1xf32, #tpu.memory_space<vmem>>, vector<8x1xf32>,
    } else {
    }
    %c0 = arith.constant 0 : index
    %c0_1 = arith.constant 0 : index
    %3 = vector.load %arg2[%c0, %c0_1] : memref<8x32xf32, #tpu.memory_space<vmem>>, vector<8x32xf32>
    %c0_2 = arith.constant 0 : index
    %c0_3 = arith.constant 0 : index
    %4 = vector.load %arg3[%c0_2, %c0_3] : memref<8x32xf32, #tpu.memory_space<vmem>>, vector<8x32xf32>
    %c0_4 = arith.constant 0 : index
    %c0_5 = arith.constant 0 : index
    %5 = vector.load %arg4[%c0_4, %c0_5] : memref<32x48xf32, #tpu.memory_space<vmem>>, vector<32x48xf32>
    %cst = arith.constant dense<0.000000e+00> : vector<8x48xf32>
    %6 = tpu.matmul %3, %5, %cst {dimension_numbers = #tpu.dot_dimension_numbers<[1], [0], [0], [1], [0, 0, 1, 1], [], []>} : vector<8x32xf32>, vector<32x48xf32>, vector<8x48xf32> -> vector<8x48xf32>
    %cst_6 = arith.constant dense<0.000000e+00> : vector<8x48xf32>
    %7 = tpu.matmul %4, %5, %cst_6 {dimension_numbers = #tpu.dot_dimension_numbers<[1], [0], [0], [1], [0, 0, 1, 1], [], []>} : vector<8x32xf32>, vector<32x48xf32>, vector<8x48xf32> -> vector<8x48xf32>
    %c0_7 = arith.constant 0 : index
    %c0_8 = arith.constant 0 : index
    %8 = vector.load %arg6[%c0_7, %c0_8] : memref<8x1xf32, #tpu.memory_space<vmem>>, vector<8x1xf32>
    %9 = math.exp %6 : vector<8x48xf32>
    %cst_9 = arith.constant dense<0.000000e+00> : vector<8xf32>
    %10 = vector.multi_reduction <add>, %9, %cst_9 [1] : vector<8x48xf32> to vector<8xf32>
    %11 = vector.shape_cast %10 : vector<8xf32> to vector<8x1xf32>
    %12 = arith.addf %8, %11 : vector<8x1xf32>
    %c0_10 = arith.constant 0 : index
    %c0_11 = arith.constant 0 : index
    %13 = vector.load %arg6[%c0_10, %c0_11] : memref<8x1xf32, #tpu.memory_space<vmem>>, vector<8x1xf32>
    tpu.vector_store %arg6[%c0_10, %c0_11], %12 {strides = array<i32>} : memref<8x1xf32, #tpu.memory_space<vmem>>, vector<8x1xf32>,
    %c0_12 = arith.constant 0 : index
    %c0_13 = arith.constant 0 : index
    %14 = vector.load %arg7[%c0_12, %c0_13] : memref<8x1xf32, #tpu.memory_space<vmem>>, vector<8x1xf32>
    %15 = math.exp %7 : vector<8x48xf32>
    %cst_14 = arith.constant dense<0.000000e+00> : vector<8xf32>
    %16 = vector.multi_reduction <add>, %15, %cst_14 [1] : vector<8x48xf32> to vector<8xf32>
    %17 = vector.shape_cast %16 : vector<8xf32> to vector<8x1xf32>
    %18 = arith.addf %14, %17 : vector<8x1xf32>
    %c0_15 = arith.constant 0 : index
    %c0_16 = arith.constant 0 : index
    %19 = vector.load %arg7[%c0_15, %c0_16] : memref<8x1xf32, #tpu.memory_space<vmem>>, vector<8x1xf32>
    tpu.vector_store %arg7[%c0_15, %c0_16], %18 {strides = array<i32>} : memref<8x1xf32, #tpu.memory_space<vmem>>, vector<8x1xf32>,
    %c0_i32_17 = arith.constant 0 : i32
    %20 = arith.cmpi eq, %arg1, %c0_i32_17 : i32
    %21 = arith.extui %20 : i1 to i32
    %c0_i32_18 = arith.constant 0 : i32
    %22 = arith.cmpi ne, %21, %c0_i32_18 : i32
    scf.if %22 {
      %23 = arith.mulf %3, %4 : vector<8x32xf32>
      %cst_19 = arith.constant dense<0.000000e+00> : vector<8xf32>
      %24 = vector.multi_reduction <add>, %23, %cst_19 [1] : vector<8x32xf32> to vector<8xf32>
      %25 = vector.shape_cast %24 : vector<8xf32> to vector<8x1xf32>
      %c0_20 = arith.constant 0 : index
      %c0_21 = arith.constant 0 : index
      %26 = vector.load %arg6[%c0_20, %c0_21] : memref<8x1xf32, #tpu.memory_space<vmem>>, vector<8x1xf32>
      %cst_22 = arith.constant 15.3890562 : f32
      %27 = vector.broadcast %cst_22 : f32 to vector<8x1xf32>
      %28 = arith.subf %26, %27 : vector<8x1xf32>
      %29 = math.log %28 : vector<8x1xf32>
      %c0_23 = arith.constant 0 : index
      %c0_24 = arith.constant 0 : index
      %30 = vector.load %arg7[%c0_23, %c0_24] : memref<8x1xf32, #tpu.memory_space<vmem>>, vector<8x1xf32>
      %cst_25 = arith.constant 15.3890562 : f32
      %31 = vector.broadcast %cst_25 : f32 to vector<8x1xf32>
      %32 = arith.subf %30, %31 : vector<8x1xf32>
      %33 = math.log %32 : vector<8x1xf32>
      %34 = arith.addf %29, %33 : vector<8x1xf32>
      %cst_26 = arith.constant 2.000000e+00 : f32
      %35 = vector.broadcast %cst_26 : f32 to vector<8x1xf32>
      %36 = arith.mulf %35, %25 : vector<8x1xf32>
      %37 = arith.subf %34, %36 : vector<8x1xf32>
      %c0_27 = arith.constant 0 : index
      %c0_28 = arith.constant 0 : index
      %38 = vector.load %arg5[%c0_27, %c0_28] : memref<8x1xf32, #tpu.memory_space<vmem>>, vector<8x1xf32>
      tpu.vector_store %arg5[%c0_27, %c0_28], %37 {strides = array<i32>} : memref<8x1xf32, #tpu.memory_space<vmem>>, vector<8x1xf32>,
    } else {
    }
    return
  }
  func.func @transform_0(%arg0: i32, %arg1: i32) -> (i32, i32) {
    %c0_i32 = arith.constant 0 : i32
    %c0_i32_0 = arith.constant 0 : i32
    return %arg0, %c0_i32 : i32, i32
  }
  func.func @transform_1(%arg0: i32, %arg1: i32) -> (i32, i32) {
    %c0_i32 = arith.constant 0 : i32
    %c0_i32_0 = arith.constant 0 : i32
    return %arg0, %c0_i32 : i32, i32
  }
  func.func @transform_2(%arg0: i32, %arg1: i32) -> (i32, i32) {
    %c0_i32 = arith.constant 0 : i32
    %c0_i32_0 = arith.constant 0 : i32
    return %c0_i32, %arg1 : i32, i32
  }
  func.func @transform_3(%arg0: i32, %arg1: i32) -> (i32, i32) {
    %c0_i32 = arith.constant 0 : i32
    %c0_i32_0 = arith.constant 0 : i32
    return %arg0, %c0_i32 : i32, i32
  }
}

</mosaic_0001>

<bundles_post_ra>
// kernel: tpu_custom_call.1
= control target key start
LH: loop header
LB: loop body
LE: loop exit
PB: predicated region body
PF: predicated region fallthrough
CT: control target
= control target key end

     0   :  { %8 = vsyncpa [#allocation5], 0  ;;  %s1087_s0 = inlined_call_operand.hbm [shape: f32[24,32], index: 0, kind: input, shape index: {}]   ;;  %s1088_s1 = inlined_call_operand.hbm [shape: f32[24,32], index: 1, kind: input, shape index: {}]   ;;  %s1089_s2 = inlined_call_operand.hbm [shape: f32[32,48], index: 2, kind: input, shape index: {}]   ;;  %s1090_s3 = inlined_call_operand.vmem [shape: f32[24,1], index: 3, kind: output, shape index: {}]  }
   0x1   :  { %10 = vsyncpa [#allocation5 + $0x1], 0 }
   0x2   :  { %11 = vsyncpa [#allocation7], 0 }
   0x3   :  { %13 = vsyncpa [#allocation7 + $0x1], 0  ;;  %s884_s12 = smov 0   ;;  %s886_s13 = smov 0  }
   0x4   :  { %s888_s14 = smov 0   ;;  %s890_s15 = smov 0  }
   0x5   :  { %s892_s16 = smov 0   ;;  %s894_s17 = smov 0  }
   0x6 LB: > { %s560_s18 = sadd.s32 4294967295, %s854_s17   ;;  %p51_p0 = scmp.ne.s32.totalorder %s838_s13, %s834_s12  ;;  %s854_s17 = sphi %s894_s17, %s19_s17   ;;  %s850_s16 = sphi %s892_s16, %s1107_s16   ;;  %s846_s15 = sphi %s890_s15, %s1106_s15   ;;  %s842_s14 = sphi %s888_s14, %s1105_s14   ;;  %s838_s13 = sphi %s886_s13, %s1104_s13   ;;  %s834_s12 = sphi %s884_s12, %s1103_s12  }
   0x7   : > { %p916_p1 = scmp.eq.s32.totalorder %s560_s18, 0  ;;  %p562_p2 = scmp.ge.s32.totalorder %s854_s17, 1 }
   0x8   : > { %p140_p3 = scmp.lt.s32.totalorder %s854_s17, 4  ;;  %s856_s22 = smov [#allocation8]  }
   0x9   : > { %s1095_s19 = scalar_select %p916_p1, 1, 0 }
   0xa   : > { %p924_p4 = por %p916_p1, %p51_p0  ;;  %p928_p5 = pnand %p562_p2, %p140_p3 }
   0xb   : > { %s154_s23 = sshll.u32 %s856_s22, 4  ;;  %s31_s25 = sadd.s32 1, %s850_s16  ;;  %s155_s23 = int_to_ptr.vmem [resolvable:$true] %s154_s23 }
   0xc   : > { %s1096_s20 = scalar_select %p924_p4, 1, 0 }
   0xd   : > { %s1097_s21 = scalar_select %p928_p5, 1, 0 }
   0xe   : > { %p632_p6 = pneg %p928_p5  ;;  %s708_s28 = scalar_lea.hbm %s1089_s2, 512 }
   0xf   : > { %p709_p8 = scmp.ne.s32.totalorder %s1089_s2, %s708_s28  ;;  %p715_p12 = scmp.lt.u32.totalorder %s708_s28, %s1089_s2 }
  0x10   : > { %p936_p7 = pnand %p632_p6, %p916_p1 }
  0x12   : > { %p710_p9 = pneg %p936_p7 }
  0x14   : > { %p711_p10 = pnand %p710_p9, %p709_p8 }
  0x16   : > { %p712_p11 = pneg %p711_p10 }
  0x18   : > { %p717_p13 = pnand %p715_p12, %p712_p11 }
  0x1a   : > { %720 = shalt.err (!%p717_p13)
}
  0x1b   : > { %s721_s6 = scalar_lea.vmem %s155_s23, 512  ;;  %p729_p6 = scmp.lt.s32.totalorder %s155_s23, %s155_s23 }
  0x1c   : > { %p722_p0 = scmp.ne.s32.totalorder %s155_s23, %s721_s6  ;;  %p730_p1 = scmp.lt.s32.totalorder %s721_s6, %s721_s6 }
  0x1e   : > { %p724_p2 = pnand %p722_p0, %p710_p9  ;;  %p731_p4 = por %p730_p1, %p729_p6 }
  0x20   : > { %p725_p3 = pneg %p724_p2 }
  0x22   : > { %p732_p5 = pnand %p731_p4, %p725_p3 }
  0x24   : > { %735 = shalt.err (!%p732_p5)
}
  0x25   : > { %s857_s7 = smov 128   ;;  %s858_s8 = smov 8  }
  0x26   : > { %635 = dma.hbm_to_vmem [thread:$0]  (!%p936_p7), %s1089_s2, 512, %s155_s23, [#allocation7], %s857_s7, %s857_s7, %s858_s8  }
  0x27   : > { %p33_p1 = scmp.ge.s32.totalorder %s31_s25, 3  ;;  %s38_s11 = sadd.s32 1, %s842_s14 }
  0x28   : > { %p45_p4 = scmp.ne.s32.totalorder %s842_s14, %s838_s13  ;;  %p46_p5 = scmp.eq.s32.totalorder %s854_s17, 0 }
  0x29   : > { %s1109_s25 = smov (%p33_p1, %s31_s25), 0  ;;  %p644_p9 = scmp.lt.s32.totalorder %s854_s17, 3 }
  0x2a   : > { %p47_p8 = por %p46_p5, %p45_p4  ;;  %s35_s12 = ssub.s32 %s850_s16, %s1109_s25 }
  0x2b   : > { %s168_s22 = sand.u32 1, %s842_s14   ;;  %p36_p10 = scmp.eq.s32.totalorder %s35_s12, 0 }
  0x2c   : > { %s967_s26 = sshll.u32 %s168_s22, 3  ;;  %s566_s24 = sshll.u32 %s850_s16, 7 }
  0x2d   : > { %s971_s27 = scalar_select %p36_p10, %s842_s14, %s38_s11  }
  0x2e   : > { %s976_s29 = scalar_lea.hbm %s1087_s0, %s566_s24  ;;  %s172_s30 = scalar_lea.vmem [#allocation4], %s967_s26 }
  0x2f   : > { %s179_s4 = sshll.u32 %s172_s30, 4  ;;  %p979_p7 = pnand %p644_p9, %p47_p8  ;;  %s983_s4 = int_to_ptr.vmem [resolvable:$true] %s179_s4 }
  0x30   : > { %s988_s8 = scalar_lea.hbm %s1088_s1, %s566_s24  ;;  %s169_s9 = scalar_lea.sflag [#allocation5], %s168_s22 }
  0x31   : > { %s736_s10 = scalar_lea.hbm %s976_s29, 128  ;;  %p738_p12 = pneg %p979_p7 }
  0x32   : > { %p737_p11 = scmp.ne.s32.totalorder %s976_s29, %s736_s10  ;;  %s741_s28 = scalar_lea.hbm %s1087_s0, 384 }
  0x33   : > { %p742_p2 = scmp.lt.u32.totalorder %s976_s29, %s1087_s0  ;;  %p743_p3 = scmp.lt.u32.totalorder %s741_s28, %s736_s10 }
  0x34   : > { %p739_p13 = pnand %p738_p12, %p737_p11  ;;  %p745_p1 = scmp.lt.u32.totalorder %s736_s10, %s976_s29 }
  0x35   : > { %p744_p6 = por %p743_p3, %p742_p2 }
  0x36   : > { %p740_p0 = pneg %p739_p13 }
  0x37   : > { %p746_p4 = por %p745_p1, %p744_p6 }
  0x39   : > { %p747_p5 = pnand %p746_p4, %p740_p0 }
  0x3b   : > { %750 = shalt.err (!%p747_p5)
}
  0x3c   : > { %s751_s22 = scalar_lea.vmem %s983_s4, 128  ;;  %s859_s24 = smov [#allocation4]  }
  0x3d   : > { %p752_p8 = scmp.ne.s32.totalorder %s983_s4, %s751_s22  ;;  %s756_s6 = sshll.u32 %s859_s24, 4  ;;  %s757_s6 = int_to_ptr.vmem [resolvable:$false] %s756_s6 }
  0x3e   : > { %s758_s7 = scalar_lea.vmem %s757_s6, 256  ;;  %p759_p11 = scmp.lt.s32.totalorder %s983_s4, %s757_s6 }
  0x3f   : > { %p754_p9 = pnand %p752_p8, %p738_p12  ;;  %p760_p13 = scmp.lt.s32.totalorder %s758_s7, %s751_s22 }
  0x41   : > { %p755_p10 = pneg %p754_p9  ;;  %p761_p2 = por %p760_p13, %p759_p11 }
  0x43   : > { %p762_p3 = pnand %p761_p2, %p755_p10 }
  0x45   : > { %765 = shalt.err (!%p762_p3)
}
  0x46   : > { %639 = dma.hbm_to_vmem [thread:$0]  (!%p979_p7), %s976_s29, 128, %s983_s4, %s169_s9  }
  0x47   : > { %s186_s10 = sand.u32 1, %s854_s17   ;;  %s190_s11 = scalar_lea.vmem [#allocation6], %s967_s26 }
  0x48   : > { %s197_s12 = sshll.u32 %s190_s11, 4  ;;  %s187_s28 = scalar_lea.sflag [#allocation7], %s186_s10  ;;  %s198_s12 = int_to_ptr.vmem [resolvable:$true] %s197_s12 }
  0x49   : > { %s766_s23 = scalar_lea.hbm %s988_s8, 128  ;;  %s771_s24 = scalar_lea.hbm %s1088_s1, 384 }
  0x4a   : > { %p767_p0 = scmp.ne.s32.totalorder %s988_s8, %s766_s23  ;;  %p772_p4 = scmp.lt.u32.totalorder %s988_s8, %s1088_s1 }
  0x4b   : > { %p773_p5 = scmp.lt.u32.totalorder %s771_s24, %s766_s23  ;;  %p775_p9 = scmp.lt.u32.totalorder %s766_s23, %s988_s8 }
  0x4c   : > { %p769_p6 = pnand %p767_p0, %p738_p12 }
  0x4d   : > { %p774_p8 = por %p773_p5, %p772_p4 }
  0x4e   : > { %p770_p1 = pneg %p769_p6 }
  0x4f   : > { %p776_p10 = por %p775_p9, %p774_p8 }
  0x51   : > { %p777_p11 = pnand %p776_p10, %p770_p1 }
  0x53   : > { %780 = shalt.err (!%p777_p11)
}
  0x54   : > { %s781_s26 = scalar_lea.vmem %s198_s12, 128  ;;  %s860_s29 = smov [#allocation6]  }
  0x55   : > { %p782_p13 = scmp.ne.s32.totalorder %s198_s12, %s781_s26  ;;  %s786_s4 = sshll.u32 %s860_s29, 4  ;;  %s787_s4 = int_to_ptr.vmem [resolvable:$false] %s786_s4 }
  0x56   : > { %s788_s9 = scalar_lea.vmem %s787_s4, 256  ;;  %p789_p0 = scmp.lt.s32.totalorder %s198_s12, %s787_s4 }
  0x57   : > { %p784_p2 = pnand %p782_p13, %p738_p12  ;;  %p790_p6 = scmp.lt.s32.totalorder %s788_s9, %s781_s26 }
  0x59   : > { %p785_p3 = pneg %p784_p2  ;;  %p791_p4 = por %p790_p6, %p789_p0 }
  0x5b   : > { %p792_p5 = pnand %p791_p4, %p785_p3 }
  0x5d   : > { %795 = shalt.err (!%p792_p5)
}
  0x5e   : > { %642 = dma.hbm_to_vmem [thread:$0]  (!%p979_p7), %s988_s8, 128, %s198_s12, %s187_s28  }
  0x5f   : > { %p1100_p1 = scmp.ne.s32.totalorder %s1097_s21, 0 }
  0x60   : > { %s208_s10 = sand.u32 (!%p1100_p1), 1, %s838_s13   ;;  %p1101_p12 = scmp.ne.s32.totalorder (!%p1100_p1), %s1096_s20, 0 }
  0x61   : > { %206 = sbr.rel (%p1100_p1) target bundleno = 524 (0x20c), region = 32  ;;  %s1039_s11 = sshll.u32 (!%p1100_p1), %s208_s10, 3 }
  0x62   : > { %s209_s23 = scalar_lea.sflag (!%p1100_p1), [#allocation5], %s208_s10  ;;  %s212_s30 = scalar_lea.vmem (!%p1100_p1), [#allocation4], %s1039_s11 }
  0x68   : > { %821 = dma.done.wait (%p1101_p12), %s209_s23, 128  }
  0x69   : > { %823 = vsyncadd (%p1101_p12), %s209_s23, 4294967168  ;;  %s217_s5 = sand.u32 1, %s560_s18   ;;  %s221_s8 = scalar_lea.vmem [#allocation6], %s1039_s11 }
  0x6a   : > { %s218_s21 = scalar_lea.sflag [#allocation7], %s217_s5 }
  0x6b   : > { %825 = dma.done.wait (%p1101_p12), %s218_s21, 128  }
  0x6c   : > { %827 = vsyncadd (%p1101_p12), %s218_s21, 4294967168  ;;  %p1102_p7 = scmp.ne.s32.totalorder %s1095_s19, 0 }
  0x6e   : > { %829 = dma.done.wait (%p1102_p7), [#allocation7], 512  }
  0x6f   : > { %831 = vsyncadd (%p1102_p7), [#allocation7], 4294966784  ;;  %vm260_vm0 = vcmask 7168   ;;  %v861_v0 = vmov 0.0|0.0   ;;  %v862_v1 = vmov 0.0   ;;  %vm863_vm1 = vmmov 0  }
  0x70   : > { %612 = vmatprep.subr.bf16.mxu0 %v861_v0  ;;  %618 = vmatprep.subr.bf16.mxu1 %v861_v0  ;;  %261 = vst.msk [vmem:[#allocation2] sm:$0xff] %vm260_vm0, %v862_v1  ;;  %262 = vst.msk [vmem:[#allocation3] sm:$0xff] %vm260_vm0, %v862_v1  ;;  %v265_v2 = vld [vmem:[#allocation8] sm:$0xff]  ;;  %v266_v3 = vld [vmem:[#allocation8 + $0x8] sm:$0xff]  ;;  %vm269_vm2 = vcmask 261120   ;;  %vm419_vm3 = vcmask 392192  }
  0x71   : > { %598 = vmatprep.mubr.msk.f32.mxu0 %vm863_vm1, %v862_v1  ;;  %609 = vmatprep.mubr.msk.f32.mxu1 %vm863_vm1, %v862_v1  ;;  %v267_v4 = vld [vmem:[#allocation8 + $0x10] sm:$0xff]  ;;  %v613_v5 = vpack.c.bf16 %v266_v3, %v265_v2  ;;  %v268_v6 = vld [vmem:[#allocation8 + $0x18] sm:$0xff]  ;;  %v263_v8 = vld [vmem:[%s212_s30] sm:$0xff]  ;;  %p252_p8 = scmp.lt.s32.totalorder %s846_s15, 2 }
  0x72   : > { %v616_v7 = vpack.c.bf16 %v268_v6, %v267_v4  ;;  %v264_v9 = vld [vmem:[%s221_s8] sm:$0xff] }
  0x73   : > { %614 = vmatpush3.bf16.msra.mxu0 %v613_v5  ;;  %620 = vmatpush3.bf16.msra.mxu1 %v613_v5  ;;  %v437_v10 = vmul.f32 %v264_v9, %v263_v8  ;;  %s1111_s15 = smov (!%p252_p8, %s846_s15), 2 }
  0x74   : > { %615 = vmatprep.subr.bf16.mxu0 %v861_v0  ;;  %621 = vmatprep.subr.bf16.mxu1 %v861_v0  ;;  %s573_s18 = sshll.u32 %s1111_s15, 3 }
  0x75   : > { %v438_v11 = vsel %vm269_vm2, %v437_v10, 0.0  ;;  %s255_s12 = scalar_lea.vmem %s1090_s3, %s573_s18 }
  0x76   : > { %439 = vadd.xlane.f32.xlu1 %v438_v11 }
  0x77   : > { %617 = vmatpush3.bf16.msra.mxu0 %v616_v7  ;;  %623 = vmatpush3.bf16.msra.mxu1 %v616_v7  ;;  %v416_v22 = vld [vmem:[#allocation2] sm:$0xff]  ;;  %v426_v25 = vld [vmem:[#allocation3] sm:$0xff] }
  0x7a   : > { %599 = vmatmul.mubr.msk.f32.vlgmr.msra.gmra.mrb[0].mxu0 %vm269_vm2, %v263_v8  ;;  %610 = vmatmul.mubr.msk.f32.vlgmr.msra.gmra.mrb[0].mxu1 %vm269_vm2, %v264_v9 }
 0x103   : > { %v440_v33 = vpop.xlane.xlu1 %439 }
 0x104   : > { %v450_v37 = vmul.f32 2.0, %v440_v33 }
 0x14d   : > { %v339_v12 = vpop.f32.mrb[0].mxu0  ;;  %v412_v13 = vpop.f32.mrb[0].mxu1 }
 0x14e   : > { %v417_v14 = vmul.f32 1.442695, %v339_v12  ;;  %v600_v15 = vpop.f32.mrb[1].mxu0  ;;  %v427_v16 = vmul.f32 1.442695, %v412_v13  ;;  %v611_v17 = vpop.f32.mrb[1].mxu1 }
 0x150   : > { %700 = vpow2.f32 %v417_v14 }
 0x151   : > { %702 = vpow2.f32 %v427_v16 }
 0x15a   : > { %v701_v18 = vpop.eup %700 }
 0x15b   : > { %v703_v19 = vpop.eup %702  ;;  %v420_v20 = vsel %vm419_vm3, %v701_v18, 0.0 }
 0x15c   : > { %421 = vadd.xlane.f32.xlu0 %v420_v20  ;;  %v429_v21 = vsel %vm419_vm3, %v703_v19, 0.0 }
 0x160   : > { %430 = vadd.xlane.f32.xlu0 %v429_v21 }
 0x1e9   : > { %v422_v23 = vpop.xlane.xlu0 %421 }
 0x1ea   : > { %v423_v24 = vadd.f32 %v422_v23, %v416_v22 }
 0x1ec   : > { %425 = vst.msk [vmem:[#allocation2] sm:$0xff] %vm260_vm0, %v423_v24 }
 0x1ed   : > { %v431_v26 = vpop.xlane.xlu0 %430 }
 0x1ee   : > { %v432_v27 = vadd.f32 %v431_v26, %v426_v25 }
 0x1f0   : > { %433 = vst.msk [vmem:[#allocation3] sm:$0xff] %vm260_vm0, %v432_v27 }
 0x1f3   : > { %v441_v28 = vld [vmem:[#allocation2] sm:$0xff] }
 0x1f4   : > { %v576_v29 = vadd.f32 -15.389056, %v441_v28 }
 0x1f6   : > { %704 = vlog2.f32 %v576_v29 }
 0x1f7   : > { %v445_v30 = vld [vmem:[#allocation3] sm:$0xff] }
 0x1f8   : > { %v577_v31 = vadd.f32 -15.389056, %v445_v30 }
 0x1fa   : > { %706 = vlog2.f32 %v577_v31 }
 0x200   : > { %v705_v32 = vpop.eup %704 }
 0x201   : > { %v444_v35 = vmul.f32 0.6931472, %v705_v32 }
 0x204   : > { %v707_v34 = vpop.eup %706 }
 0x205   : > { %v448_v36 = vmul.f32 0.6931472, %v707_v34 }
 0x207   : > { %v449_v38 = vadd.f32 %v448_v36, %v444_v35 }
 0x209   : > { %v451_v39 = vsub.f32 %v449_v38, %v450_v37 }
 0x20b   : > { %452 = vst.msk [vmem:[%s255_s12] sm:$0xff] %vm260_vm0, %v451_v39 }
 0x20c PF: > { %s19_s17 = sadd.s32 1, %s854_s17   ;;  %s1103_s12 = smov %s838_s13 }
 0x20d   : > { %p16_p9 = scmp.ge.s32.totalorder %s19_s17, 5   ;;  %s1104_s13 = smov %s842_s14 }
 0x20e   : > { %s1105_s14 = smov %s971_s27  ;;  %s1106_s15 = smov %s850_s16 }
 0x20f   : > { %s1107_s16 = smov %s1109_s25  ;;  %18 = sbr.rel (!%p16_p9) target bundleno = 6 (0x6), region = 98 }
 0x216   :  { %472 = vsyncpa [#allocation5], 1 }
 0x217   :  { %474 = vsyncpa [#allocation5 + $0x1], 1 }
 0x218   :  { %475 = vsyncpa [#allocation7], 1 }
 0x219   :  { %477 = vsyncpa [#allocation7 + $0x1], 1 }

</bundles_post_ra>
